<compile_context>
chip_gen: v6e
topology: v6e:2x2x1
jax: 0.10.0
libtpu: 0.0.40
codegen_flags: <defaults>
</compile_context>

<pallas_src>
import jax
import jax.numpy as jnp
from jax.experimental import pallas as pl
from jax.experimental.pallas import tpu as pltpu

# Landmark index pairs used for the inter-ocular normalization per dataset.
_NORM_IDX = {
    "WFLW": (60, 72),
    "300W": (36, 45),
    "COFW": (17, 16),
}


def _nme_kernel(coords_ref, scale_ref, out_ref):
    # coords_ref: (4, b_tile, N) = [pred_x, pred_y, gt_x, gt_y], lane axis = N.
    px = coords_ref[0].astype(jnp.float32)
    py = coords_ref[1].astype(jnp.float32)
    gx = coords_ref[2].astype(jnp.float32)
    gy = coords_ref[3].astype(jnp.float32)

    dx = px - gx
    dy = py - gy
    dist = jnp.sqrt(dx * dx + dy * dy)            # (b_tile, N), VPU + EUP only

    # scale = (1/N) / inter_ocular_norm, precomputed lane-dense in the wrapper.
    nme = jnp.sum(dist, axis=1)                   # (b_tile,)
    out_ref[...] = nme[None, :] * scale_ref[...]  # lane-dense (1, b_tile) store


def nme_loss(pred, gt, name, *, max_b_tile=1024):
    """Pallas TPU implementation of NME_loss.forward(pred, gt)."""
    if name not in _NORM_IDX:
        raise ValueError("Wrong Dataset")
    idx_a, idx_b = _NORM_IDX[name]

    B, N, D = pred.shape
    assert D == 2 and gt.shape == (B, N, D)

    # One fused transpose/stack: (4, B, N) = [px, py, gx, gy], input dtype kept.
    coords = jnp.stack(
        [pred[..., 0], pred[..., 1], gt[..., 0], gt[..., 1]], axis=0
    )

    # Inter-ocular norm + the mean's 1/N folded into one (B,) scale vector,
    # computed on just two gt rows (fused by XLA). Division by zero (coincident
    # landmarks) yields inf, matching the PyTorch reference.
    diff = (gt[:, idx_a, :] - gt[:, idx_b, :]).astype(jnp.float32)
    norm = jnp.sqrt(jnp.sum(diff * diff, axis=-1))          # (B,)
    scale = ((1.0 / float(N)) / norm)[None, :]              # (1, B), lane-dense

    # Batch tiling: a single full-extent tile for B <= max_b_tile (no padding,
    # no extra copies); otherwise 1024-row tiles (multiple of 8 sublanes and
    # 128 lanes) with a ragged last block (OOB stores are masked).
    b_tile = B if B <= max_b_tile else max_b_tile
    num_tiles = pl.cdiv(B, b_tile)

    out = pl.pallas_call(
        _nme_kernel,
        out_shape=jax.ShapeDtypeStruct((1, B), jnp.float32),
        grid=(num_tiles,),
        in_specs=[
            pl.BlockSpec((4, b_tile, N), lambda i: (0, i, 0)),
            pl.BlockSpec((1, b_tile), lambda i: (0, i)),
        ],
        out_specs=pl.BlockSpec((1, b_tile), lambda i: (0, i)),
        compiler_params=pltpu.CompilerParams(
            dimension_semantics=("parallel",)
        ),
    )(coords, scale)

    return out[0]


def _nme_loss_ref(pred, gt, name):
    """Pure-JAX reference (mirrors the PyTorch forward)."""
    idx_a, idx_b = _NORM_IDX[name]
    norm = jnp.linalg.norm(gt[:, idx_a, :] - gt[:, idx_b, :], axis=1)
    dist = jnp.linalg.norm(pred - gt, ord=2, axis=2)
    return jnp.mean(dist / norm[:, None], axis=1)


if __name__ == "__main__":
    key = jax.random.PRNGKey(0)

    # Small deterministic configs; covers all three datasets / odd batch sizes.
    # TODO(synk): for tiny per-step batches this launch is dominated by fixed
    # pallas_call/DMA overhead; at eval time feed the whole batch in one call.
    configs = [
        ("300W", 2, 68),
        ("WFLW", 3, 98),
        ("COFW", 5, 29),
    ]

    ok = True
    for name, B, N in configs:
        key, k_pred, k_gt = jax.random.split(key, 3)
        pred = jax.random.uniform(k_pred, (B, N, 2), dtype=jnp.float32) * 256.0
        gt = jax.random.uniform(k_gt, (B, N, 2), dtype=jnp.float32) * 256.0

        out = jax.block_until_ready(nme_loss(pred, gt, name))
        ref = _nme_loss_ref(pred, gt, name)

        if out.shape != (B,) or not jnp.allclose(out, ref, rtol=1e-5, atol=1e-5):
            ok = False
            print("MISMATCH", name, out, ref)

    if ok:
        print("KERNEL_OK")
</pallas_src>

<mosaic_0001>
module attributes {stable_mosaic.version = 11 : i64} {
  func.func @_nme_kernel(%arg0: i32, %arg1: memref<4x2x68xf32, #tpu.memory_space<vmem>>, %arg2: memref<1x2xf32, #tpu.memory_space<vmem>>, %arg3: memref<1x2xf32, #tpu.memory_space<vmem>>) attributes {dimension_semantics = [#tpu.dimension_semantics<parallel>], iteration_bounds = array<i64: 1>, scalar_prefetch = 0 : i64, scratch_operands = 0 : i64, tpu.core_type = #tpu.core_type<tc>, window_params = [{transform_indices = @transform_0, window_bounds = array<i64: 4, 2, 68>}, {transform_indices = @transform_1, window_bounds = array<i64: 1, 2>}, {transform_indices = @transform_2, window_bounds = array<i64: 1, 2>}]} {
    %c0 = arith.constant 0 : index
    %c0_0 = arith.constant 0 : index
    %c0_1 = arith.constant 0 : index
    %0 = vector.load %arg1[%c0, %c0_0, %c0_1] : memref<4x2x68xf32, #tpu.memory_space<vmem>>, vector<1x2x68xf32>
    %1 = vector.shape_cast %0 : vector<1x2x68xf32> to vector<2x68xf32>
    %c1 = arith.constant 1 : index
    %c0_2 = arith.constant 0 : index
    %c0_3 = arith.constant 0 : index
    %2 = vector.load %arg1[%c1, %c0_2, %c0_3] : memref<4x2x68xf32, #tpu.memory_space<vmem>>, vector<1x2x68xf32>
    %3 = vector.shape_cast %2 : vector<1x2x68xf32> to vector<2x68xf32>
    %c2 = arith.constant 2 : index
    %c0_4 = arith.constant 0 : index
    %c0_5 = arith.constant 0 : index
    %4 = vector.load %arg1[%c2, %c0_4, %c0_5] : memref<4x2x68xf32, #tpu.memory_space<vmem>>, vector<1x2x68xf32>
    %5 = vector.shape_cast %4 : vector<1x2x68xf32> to vector<2x68xf32>
    %c3 = arith.constant 3 : index
    %c0_6 = arith.constant 0 : index
    %c0_7 = arith.constant 0 : index
    %6 = vector.load %arg1[%c3, %c0_6, %c0_7] : memref<4x2x68xf32, #tpu.memory_space<vmem>>, vector<1x2x68xf32>
    %7 = vector.shape_cast %6 : vector<1x2x68xf32> to vector<2x68xf32>
    %8 = arith.subf %1, %5 : vector<2x68xf32>
    %9 = arith.subf %3, %7 : vector<2x68xf32>
    %10 = arith.mulf %8, %8 : vector<2x68xf32>
    %11 = arith.mulf %9, %9 : vector<2x68xf32>
    %12 = arith.addf %10, %11 : vector<2x68xf32>
    %13 = math.sqrt %12 : vector<2x68xf32>
    %cst = arith.constant dense<0.000000e+00> : vector<2xf32>
    %14 = vector.multi_reduction <add>, %13, %cst [1] : vector<2x68xf32> to vector<2xf32>
    %15 = vector.shape_cast %14 : vector<2xf32> to vector<1x2xf32>
    %c0_8 = arith.constant 0 : index
    %c0_9 = arith.constant 0 : index
    %16 = vector.load %arg2[%c0_8, %c0_9] : memref<1x2xf32, #tpu.memory_space<vmem>>, vector<1x2xf32>
    %17 = arith.mulf %15, %16 : vector<1x2xf32>
    %c0_10 = arith.constant 0 : index
    %c0_11 = arith.constant 0 : index
    %18 = vector.load %arg3[%c0_10, %c0_11] : memref<1x2xf32, #tpu.memory_space<vmem>>, vector<1x2xf32>
    tpu.vector_store %arg3[%c0_10, %c0_11], %17 {strides = array<i32>} : memref<1x2xf32, #tpu.memory_space<vmem>>, vector<1x2xf32>,
    return
  }
  func.func @transform_0(%arg0: i32) -> (i32, i32, i32) {
    %c0_i32 = arith.constant 0 : i32
    %c0_i32_0 = arith.constant 0 : i32
    %c0_i32_1 = arith.constant 0 : i32
    return %c0_i32, %arg0, %c0_i32_0 : i32, i32, i32
  }
  func.func @transform_1(%arg0: i32) -> (i32, i32) {
    %c0_i32 = arith.constant 0 : i32
    %c0_i32_0 = arith.constant 0 : i32
    return %c0_i32, %arg0 : i32, i32
  }
  func.func @transform_2(%arg0: i32) -> (i32, i32) {
    %c0_i32 = arith.constant 0 : i32
    %c0_i32_0 = arith.constant 0 : i32
    return %c0_i32, %arg0 : i32, i32
  }
}

</mosaic_0001>

<bundles_post_ra>
// kernel: tpu_custom_call.1
= control target key start
LH: loop header
LB: loop body
LE: loop exit
PB: predicated region body
PF: predicated region fallthrough
CT: control target
= control target key end

     0   :  { %7 = vsyncpa [#allocation3], 0  ;;  %s171_s0 = inlined_call_operand.hbm [shape: f32[4,2,68], index: 0, kind: input, shape index: {}]   ;;  %s172_s1 = inlined_call_operand.vmem [shape: f32[1,2], index: 1, kind: input, shape index: {}]   ;;  %s173_s2 = inlined_call_operand.hbm [shape: f32[1,2], index: 2, kind: output, shape index: {}]  }
   0x1   :  { %8 = vsyncpa [#allocation4], 0  ;;  %s142_s9 = smov [#allocation2]  }
   0x2   :  { %s14_s10 = sshll.u32 %s142_s9, 4  ;;  %s15_s10 = int_to_ptr.vmem [resolvable:$true] %s14_s10 }
   0x3   :  { %s106_s11 = scalar_lea.vmem %s15_s10, 128  ;;  %p111_p1 = scmp.lt.s32.totalorder %s15_s10, %s15_s10 }
   0x4   :  { %p107_p0 = scmp.ne.s32.totalorder %s15_s10, %s106_s11  ;;  %p112_p2 = scmp.lt.s32.totalorder %s106_s11, %s106_s11 }
   0x6   :  { %p113_p3 = por %p112_p2, %p111_p1 }
   0x8   :  { %p114_p4 = pnand %p113_p3, %p107_p0 }
   0xa   :  { %117 = shalt.err (!%p114_p4)
}
   0xb   :  { %s143_s12 = smov 32   ;;  %s144_s13 = smov 2  }
   0xc   :  { %20 = dma.hbm_to_vmem [thread:$0]  %s171_s0, 128, %s15_s10, [#allocation3], %s143_s12, %s143_s12, %s144_s13  }
   0xd   :  { %138 = dma.done.wait [#allocation3], 128  }
   0xe   :  { %139 = vsyncadd [#allocation3], 4294967168  ;;  %v26_v0 = vld [vmem:[#allocation2] sm:$0x3]  ;;  %v28_v1 = vld [vmem:[#allocation2 + $0x2] sm:$0x3]  ;;  %v64_v20 = vlaneseq }
   0xf   :  { %v30_v2 = vld [vmem:[#allocation2 + $0x4] sm:$0x3]  ;;  %v32_v3 = vld [vmem:[#allocation2 + $0x6] sm:$0x3]  ;;  %vm45_vm2 = vcmask 549888   ;;  %v145_v15 = vmov 0  }
  0x10   :  { %v33_v4 = vsub.f32 %v26_v0, %v30_v2  ;;  %v34_v5 = vsub.f32 %v28_v1, %v32_v3  ;;  %94 = vset.pattern.permute.xlu1 %v145_v15  ;;  %95 = vset.pattern.permute.xlu0 %v145_v15  ;;  %v88_v16 = vld [vmem:[%s172_s1] ss:$0 sm:$0xff]  ;;  %v65_v21 = vand.u32 127, %v64_v20  ;;  %v67_v22 = vshrl.u32 %v64_v20, 7  ;;  %s146_s17 = smov [#allocation5]  }
  0x11   :  { %s79_s18 = sshll.u32 %s146_s17, 4  ;;  %vm71_vm3 = vcmask 8192   ;;  %s80_s18 = int_to_ptr.vmem [resolvable:$true] %s79_s18 }
  0x12   :  { %v35_v6 = vmul.f32 %v33_v4, %v33_v4  ;;  %v36_v7 = vmul.f32 %v34_v5, %v34_v5  ;;  %v68_v23 = vsub.s32 %v65_v21, %v67_v22  ;;  %s118_s19 = scalar_lea.vmem %s80_s18, 16  ;;  %s122_s20 = scalar_lea.vmem %s80_s18, 32 }
  0x13   :  { %p119_p5 = scmp.ne.s32.totalorder %s80_s18, %s118_s19  ;;  %p123_p6 = scmp.lt.s32.totalorder %s80_s18, %s80_s18 }
  0x14   :  { %v37_v8 = vadd.f32 %v36_v7, %v35_v6  ;;  %p124_p7 = scmp.lt.s32.totalorder %s122_s20, %s118_s19 }
  0x16   :  { %96 = vrsqrt.f32 %v37_v8  ;;  %vm40_vm0 = vcmp.eq.f32.partialorder %v37_v8, inf  ;;  %v43_v10 = vand.u32 2147483648, %v37_v8  ;;  %vm42_vm1 = vcmp.eq.f32.partialorder %v37_v8, 0.0  ;;  %p125_p8 = por %p124_p7, %p123_p6 }
  0x18   :  { %p126_p9 = pnand %p125_p8, %p119_p5 }
  0x23   :  { %v97_v9 = vpop.eup %96 }
  0x24   :  { %v39_v11 = vmul.f32 %v97_v9, %v37_v8 }
  0x26   :  { %v41_v12 = vsel %vm40_vm0, %v37_v8, %v39_v11 }
  0x27   :  { %v44_v13 = vsel %vm42_vm1, %v43_v10, %v41_v12 }
  0x28   :  { %v46_v14 = vsel %vm45_vm2, %v44_v13, 0.0 }
  0x29   :  { %47 = vadd.xlane.f32.xlu0 %v46_v14 }
  0x3f   :  { %56 = vbcast.lane.b32.xlu0 %v88_v16, 256 }
  0xb2   :  { %v48_v17 = vpop.xlane.xlu0 %47 }
  0xb6   :  { %v57_v18 = vpop.permute.xlu0 %56 }
  0xb7   :  { %v59_v19 = vmul.f32 %v57_v18, %v48_v17 }
  0xb9   :  { %62 = vperm.xlu1 %94, %v59_v19  }
 0x134   :  { %v63_v24 = vpop.permute.xlu1 %62 }
 0x135   :  { %v69_v25 = vrot.slane %v63_v24, %v68_v23 }
 0x137   :  { %72 = vst.msk [vmem:[#allocation5] sm:$0x1] %vm71_vm3, %v69_v25 }
 0x138   :  { %129 = shalt.err (!%p126_p9)
}
 0x139   :  { %82 = dma.vmem_to_hbm [thread:$0]  %s80_s18, 16, %s173_s2, [#allocation4]  }
 0x13a   :  { %140 = dma.done.wait [#allocation4], 16  }
 0x13b   :  { %141 = vsyncadd [#allocation4], 4294967280 }
 0x13c   :  { %86 = vsyncpa [#allocation3], 1 }
 0x13d   :  { %87 = vsyncpa [#allocation4], 1 }

</bundles_post_ra>
